<compile_context>
chip_gen: v7x
topology: tpu7x:2x2x1
jax: 0.10.0
libtpu: 0.0.40
codegen_flags: <defaults>
</compile_context>

<pallas_src>
import functools

import jax
import jax.numpy as jnp
from jax.experimental import pallas as pl
from jax.experimental.pallas import tpu as pltpu

_EPS_DEFAULT = 1e-7


# ---------------------------------------------------------------------------
# Kernel 1: per-batch-element mean / unbiased std over dims [1, 2].
# ---------------------------------------------------------------------------
def _stats_kernel(x_ref, mean_ref, std_ref, sum_acc, sq_acc, *, n, eps):
    t = pl.program_id(1)

    @pl.when(t == 0)
    def _init():
        sum_acc[...] = jnp.zeros_like(sum_acc)
        sq_acc[...] = jnp.zeros_like(sq_acc)

    xv = x_ref[0].astype(jnp.float32)                        # (C, TT)
    sum_acc[...] += jnp.sum(xv, axis=1, keepdims=True)       # (C, 1)
    sq_acc[...] += jnp.sum(xv * xv, axis=1, keepdims=True)   # (C, 1)

    @pl.when(t == pl.num_programs(1) - 1)
    def _finalize():
        s = jnp.sum(sum_acc[...], axis=0, keepdims=True)     # (1, 1)
        ss = jnp.sum(sq_acc[...], axis=0, keepdims=True)     # (1, 1)
        mean = s * (1.0 / n)
        # unbiased variance (torch.std default, correction = 1)
        var = (ss - s * mean) * (1.0 / (n - 1.0))
        std = jnp.sqrt(jnp.maximum(var, 0.0))
        mean_ref[...] = (mean + eps).reshape(1, 1, 1)
        std_ref[...] = std.reshape(1, 1, 1)


def _compute_stats(x, eps, tt):
    B, C, T = x.shape
    nt = T // tt
    kernel = functools.partial(_stats_kernel, n=float(C * T), eps=float(eps))
    mean, std = pl.pallas_call(
        kernel,
        out_shape=(
            jax.ShapeDtypeStruct((B, 1, 1), jnp.float32),
            jax.ShapeDtypeStruct((B, 1, 1), jnp.float32),
        ),
        grid=(B, nt),
        in_specs=[pl.BlockSpec((1, C, tt), lambda b, t: (b, 0, t))],
        out_specs=(
            pl.BlockSpec((1, 1, 1), lambda b, t: (b, 0, 0)),
            pl.BlockSpec((1, 1, 1), lambda b, t: (b, 0, 0)),
        ),
        scratch_shapes=[
            pltpu.VMEM((C, 1), jnp.float32),
            pltpu.VMEM((C, 1), jnp.float32),
        ],
        compiler_params=pltpu.CompilerParams(
            dimension_semantics=("parallel", "arbitrary")),
    )(x)
    return mean, std


# ---------------------------------------------------------------------------
# Kernel 2/3: elementwise (de)normalization with per-batch scalars broadcast.
# ---------------------------------------------------------------------------
def _normalize_kernel(x_ref, mean_ref, std_ref, o_ref):
    inv_m = 1.0 / mean_ref[...]                               # (1, 1, 1)
    y = (x_ref[...].astype(jnp.float32) - std_ref[...]) * inv_m
    o_ref[...] = y.astype(o_ref.dtype)


def _denormalize_kernel(x_ref, mean_ref, std_ref, o_ref):
    y = x_ref[...].astype(jnp.float32) * mean_ref[...] + std_ref[...]
    o_ref[...] = y.astype(o_ref.dtype)


def _elementwise_call(kernel, x, mean, std, tt):
    B, C, T = x.shape
    nt = T // tt
    return pl.pallas_call(
        kernel,
        out_shape=jax.ShapeDtypeStruct((B, C, T), x.dtype),
        grid=(B, nt),
        in_specs=[
            pl.BlockSpec((1, C, tt), lambda b, t: (b, 0, t)),
            pl.BlockSpec((1, 1, 1), lambda b, t: (b, 0, 0)),
            pl.BlockSpec((1, 1, 1), lambda b, t: (b, 0, 0)),
        ],
        out_specs=pl.BlockSpec((1, C, tt), lambda b, t: (b, 0, t)),
        compiler_params=pltpu.CompilerParams(
            dimension_semantics=("parallel", "parallel")),
    )(x, mean, std)


# ---------------------------------------------------------------------------
# Wrappers
# ---------------------------------------------------------------------------
def _pick_tile(T, cap=65536):
    """Largest lane-aligned tile (multiple of 128) dividing T, capped for VMEM."""
    if T % 128 != 0:
        return T                     # full-extent block is always legal
    tt = min(T, (cap // 128) * 128)
    while T % tt != 0:
        tt -= 128
    return tt


def whitening_forward(waveform, epsilon=_EPS_DEFAULT, tile_t=None):
    assert waveform.ndim == 3, "expected (batch, channels, time)"
    T = waveform.shape[2]
    tt = _pick_tile(T) if tile_t is None else tile_t
    assert T % tt == 0, (T, tt)
    mean, std = _compute_stats(waveform, epsilon, tt)         # (B,1,1) each
    out = _elementwise_call(_normalize_kernel, waveform, mean, std, tt)
    return out, mean, std


def whitening_backward(waveform, mean, std, tile_t=None):
    assert waveform.ndim == 3, "expected (batch, channels, time)"
    T = waveform.shape[2]
    tt = _pick_tile(T) if tile_t is None else tile_t
    assert T % tt == 0, (T, tt)
    return _elementwise_call(_denormalize_kernel, waveform, mean, std, tt)


class WhiteningNorm:
    """Pallas-TPU port of the PyTorch WhiteningNorm module."""

    def __init__(self, epsilon=_EPS_DEFAULT, tile_t=None):
        self.epsilon = epsilon
        self.tile_t = tile_t
        self.mean = None
        self.std = None

    def forward(self, waveform, direction="forward"):
        assert direction in ("forward", "backward")
        if direction == "forward":
            out, mean, std = whitening_forward(waveform, self.epsilon, self.tile_t)
            self.mean, self.std = mean, std
            return out
        # NOTE: like the PyTorch original, 'backward' is not thread-safe
        # (it reads the stats cached by the last 'forward' call).
        return whitening_backward(waveform, self.mean, self.std, self.tile_t)

    __call__ = forward


# ---------------------------------------------------------------------------
# Self-test
# ---------------------------------------------------------------------------
if __name__ == "__main__":
    B, C, T = 2, 4, 8192
    key = jax.random.PRNGKey(0)
    x = 1.0 + 0.5 * jax.random.normal(key, (B, C, T), jnp.float32)

    # tile_t=2048 -> 4 time-tiles per batch element, exercising the tiled
    # accumulation path of the stats kernel.
    norm = WhiteningNorm(tile_t=2048)
    out = jax.block_until_ready(norm(x, direction="forward"))
    rec = jax.block_until_ready(norm(out, direction="backward"))

    # pure-JAX reference (torch semantics: unbiased std, eps added to mean)
    ref_mean = jnp.mean(x, axis=(1, 2), keepdims=True) + norm.epsilon
    ref_std = jnp.std(x, axis=(1, 2), keepdims=True, ddof=1)
    ref_out = (x - ref_std) / ref_mean
    ref_rec = ref_out * ref_mean + ref_std

    assert out.shape == x.shape and rec.shape == x.shape
    assert norm.mean.shape == (B, 1, 1) and norm.std.shape == (B, 1, 1)
    assert jnp.allclose(norm.mean, ref_mean, atol=1e-4, rtol=1e-4), float(
        jnp.max(jnp.abs(norm.mean - ref_mean)))
    assert jnp.allclose(norm.std, ref_std, atol=1e-4, rtol=1e-4), float(
        jnp.max(jnp.abs(norm.std - ref_std)))
    assert jnp.allclose(out, ref_out, atol=1e-4, rtol=1e-4), float(
        jnp.max(jnp.abs(out - ref_out)))
    assert jnp.allclose(rec, ref_rec, atol=1e-4, rtol=1e-4), float(
        jnp.max(jnp.abs(rec - ref_rec)))
    assert jnp.allclose(rec, x, atol=1e-4, rtol=1e-4), float(
        jnp.max(jnp.abs(rec - x)))

    print("KERNEL_OK")
</pallas_src>

<mosaic_0001>
module attributes {stable_mosaic.version = 11 : i64} {
  func.func @_stats_kernel(%arg0: i32, %arg1: i32, %arg2: memref<1x4x2048xf32, #tpu.memory_space<vmem>>, %arg3: memref<1x1x1xf32, #tpu.memory_space<vmem>>, %arg4: memref<1x1x1xf32, #tpu.memory_space<vmem>>, %arg5: memref<4x1xf32, #tpu.memory_space<vmem>>, %arg6: memref<4x1xf32, #tpu.memory_space<vmem>>) attributes {dimension_semantics = [#tpu.dimension_semantics<parallel>, #tpu.dimension_semantics<arbitrary>], iteration_bounds = array<i64: 2, 4>, scalar_prefetch = 0 : i64, scratch_operands = 2 : i64, tpu.core_type = #tpu.core_type<tc>, window_params = [{transform_indices = @transform_0, window_bounds = array<i64: 1, 4, 2048>}, {transform_indices = @transform_1, window_bounds = array<i64: 1, 1, 1>}, {transform_indices = @transform_2, window_bounds = array<i64: 1, 1, 1>}]} {
    %c0_i32 = arith.constant 0 : i32
    %0 = arith.cmpi eq, %arg1, %c0_i32 : i32
    %1 = arith.extui %0 : i1 to i32
    %c0_i32_0 = arith.constant 0 : i32
    %2 = arith.cmpi ne, %1, %c0_i32_0 : i32
    scf.if %2 {
      %cst_13 = arith.constant 0.000000e+00 : f32
      %19 = vector.broadcast %cst_13 : f32 to vector<4x1xf32>
      %c0_14 = arith.constant 0 : index
      %c0_15 = arith.constant 0 : index
      %20 = vector.load %arg5[%c0_14, %c0_15] : memref<4x1xf32, #tpu.memory_space<vmem>>, vector<4x1xf32>
      tpu.vector_store %arg5[%c0_14, %c0_15], %19 {strides = array<i32>} : memref<4x1xf32, #tpu.memory_space<vmem>>, vector<4x1xf32>,
      %cst_16 = arith.constant 0.000000e+00 : f32
      %21 = vector.broadcast %cst_16 : f32 to vector<4x1xf32>
      %c0_17 = arith.constant 0 : index
      %c0_18 = arith.constant 0 : index
      %22 = vector.load %arg6[%c0_17, %c0_18] : memref<4x1xf32, #tpu.memory_space<vmem>>, vector<4x1xf32>
      tpu.vector_store %arg6[%c0_17, %c0_18], %21 {strides = array<i32>} : memref<4x1xf32, #tpu.memory_space<vmem>>, vector<4x1xf32>,
    } else {
    }
    %c0 = arith.constant 0 : index
    %c0_1 = arith.constant 0 : index
    %c0_2 = arith.constant 0 : index
    %3 = vector.load %arg2[%c0, %c0_1, %c0_2] : memref<1x4x2048xf32, #tpu.memory_space<vmem>>, vector<1x4x2048xf32>
    %4 = vector.shape_cast %3 : vector<1x4x2048xf32> to vector<4x2048xf32>
    %c0_3 = arith.constant 0 : index
    %c0_4 = arith.constant 0 : index
    %5 = vector.load %arg5[%c0_3, %c0_4] : memref<4x1xf32, #tpu.memory_space<vmem>>, vector<4x1xf32>
    %cst = arith.constant dense<0.000000e+00> : vector<4xf32>
    %6 = vector.multi_reduction <add>, %4, %cst [1] : vector<4x2048xf32> to vector<4xf32>
    %7 = vector.shape_cast %6 : vector<4xf32> to vector<4x1xf32>
    %8 = arith.addf %5, %7 : vector<4x1xf32>
    %c0_5 = arith.constant 0 : index
    %c0_6 = arith.constant 0 : index
    %9 = vector.load %arg5[%c0_5, %c0_6] : memref<4x1xf32, #tpu.memory_space<vmem>>, vector<4x1xf32>
    tpu.vector_store %arg5[%c0_5, %c0_6], %8 {strides = array<i32>} : memref<4x1xf32, #tpu.memory_space<vmem>>, vector<4x1xf32>,
    %c0_7 = arith.constant 0 : index
    %c0_8 = arith.constant 0 : index
    %10 = vector.load %arg6[%c0_7, %c0_8] : memref<4x1xf32, #tpu.memory_space<vmem>>, vector<4x1xf32>
    %11 = arith.mulf %4, %4 : vector<4x2048xf32>
    %cst_9 = arith.constant dense<0.000000e+00> : vector<4xf32>
    %12 = vector.multi_reduction <add>, %11, %cst_9 [1] : vector<4x2048xf32> to vector<4xf32>
    %13 = vector.shape_cast %12 : vector<4xf32> to vector<4x1xf32>
    %14 = arith.addf %10, %13 : vector<4x1xf32>
    %c0_10 = arith.constant 0 : index
    %c0_11 = arith.constant 0 : index
    %15 = vector.load %arg6[%c0_10, %c0_11] : memref<4x1xf32, #tpu.memory_space<vmem>>, vector<4x1xf32>
    tpu.vector_store %arg6[%c0_10, %c0_11], %14 {strides = array<i32>} : memref<4x1xf32, #tpu.memory_space<vmem>>, vector<4x1xf32>,
    %c3_i32 = arith.constant 3 : i32
    %16 = arith.cmpi eq, %arg1, %c3_i32 : i32
    %17 = arith.extui %16 : i1 to i32
    %c0_i32_12 = arith.constant 0 : i32
    %18 = arith.cmpi ne, %17, %c0_i32_12 : i32
    scf.if %18 {
      %c0_13 = arith.constant 0 : index
      %c0_14 = arith.constant 0 : index
      %19 = vector.load %arg5[%c0_13, %c0_14] : memref<4x1xf32, #tpu.memory_space<vmem>>, vector<4x1xf32>
      %cst_15 = arith.constant dense<0.000000e+00> : vector<1xf32>
      %20 = vector.multi_reduction <add>, %19, %cst_15 [0] : vector<4x1xf32> to vector<1xf32>
      %21 = vector.shape_cast %20 : vector<1xf32> to vector<1x1xf32>
      %c0_16 = arith.constant 0 : index
      %c0_17 = arith.constant 0 : index
      %22 = vector.load %arg6[%c0_16, %c0_17] : memref<4x1xf32, #tpu.memory_space<vmem>>, vector<4x1xf32>
      %cst_18 = arith.constant dense<0.000000e+00> : vector<1xf32>
      %23 = vector.multi_reduction <add>, %22, %cst_18 [0] : vector<4x1xf32> to vector<1xf32>
      %24 = vector.shape_cast %23 : vector<1xf32> to vector<1x1xf32>
      %cst_19 = arith.constant 3.05175781E-5 : f32
      %25 = vector.broadcast %cst_19 : f32 to vector<1x1xf32>
      %26 = arith.mulf %21, %25 : vector<1x1xf32>
      %27 = arith.mulf %21, %26 : vector<1x1xf32>
      %28 = arith.subf %24, %27 : vector<1x1xf32>
      %cst_20 = arith.constant 3.05185094E-5 : f32
      %29 = vector.broadcast %cst_20 : f32 to vector<1x1xf32>
      %30 = arith.mulf %28, %29 : vector<1x1xf32>
      %cst_21 = arith.constant 0.000000e+00 : f32
      %31 = vector.broadcast %cst_21 : f32 to vector<1x1xf32>
      %32 = arith.maximumf %30, %31 : vector<1x1xf32>
      %33 = math.sqrt %32 : vector<1x1xf32>
      %cst_22 = arith.constant 1.000000e-07 : f32
      %34 = vector.broadcast %cst_22 : f32 to vector<1x1xf32>
      %35 = arith.addf %26, %34 : vector<1x1xf32>
      %36 = vector.shape_cast %35 : vector<1x1xf32> to vector<1x1x1xf32>
      %c0_23 = arith.constant 0 : index
      %c0_24 = arith.constant 0 : index
      %c0_25 = arith.constant 0 : index
      %37 = vector.load %arg3[%c0_23, %c0_24, %c0_25] : memref<1x1x1xf32, #tpu.memory_space<vmem>>, vector<1x1x1xf32>
      tpu.vector_store %arg3[%c0_23, %c0_24, %c0_25], %36 {strides = array<i32>} : memref<1x1x1xf32, #tpu.memory_space<vmem>>, vector<1x1x1xf32>,
      %38 = vector.shape_cast %33 : vector<1x1xf32> to vector<1x1x1xf32>
      %c0_26 = arith.constant 0 : index
      %c0_27 = arith.constant 0 : index
      %c0_28 = arith.constant 0 : index
      %39 = vector.load %arg4[%c0_26, %c0_27, %c0_28] : memref<1x1x1xf32, #tpu.memory_space<vmem>>, vector<1x1x1xf32>
      tpu.vector_store %arg4[%c0_26, %c0_27, %c0_28], %38 {strides = array<i32>} : memref<1x1x1xf32, #tpu.memory_space<vmem>>, vector<1x1x1xf32>,
    } else {
    }
    return
  }
  func.func @transform_0(%arg0: i32, %arg1: i32) -> (i32, i32, i32) {
    %c0_i32 = arith.constant 0 : i32
    %c0_i32_0 = arith.constant 0 : i32
    return %arg0, %c0_i32, %arg1 : i32, i32, i32
  }
  func.func @transform_1(%arg0: i32, %arg1: i32) -> (i32, i32, i32) {
    %c0_i32 = arith.constant 0 : i32
    %c0_i32_0 = arith.constant 0 : i32
    %c0_i32_1 = arith.constant 0 : i32
    return %arg0, %c0_i32, %c0_i32_0 : i32, i32, i32
  }
  func.func @transform_2(%arg0: i32, %arg1: i32) -> (i32, i32, i32) {
    %c0_i32 = arith.constant 0 : i32
    %c0_i32_0 = arith.constant 0 : i32
    %c0_i32_1 = arith.constant 0 : i32
    return %arg0, %c0_i32, %c0_i32_0 : i32, i32, i32
  }
}

</mosaic_0001>

<bundles_post_ra>
// kernel: tpu_custom_call.1
= control target key start
LH: loop header
LB: loop body
LE: loop exit
PB: predicated region body
PF: predicated region fallthrough
CT: control target
= control target key end

     0   :  { %8 = vsyncpa [#allocation5], 0  ;;  %s885_s0 = inlined_call_operand.hbm [shape: f32[2,4,8192], index: 0, kind: input, shape index: {}]   ;;  %s886_s1 = inlined_call_operand.vmem [shape: f32[2,1,1], index: 1, kind: output, shape index: {0}]   ;;  %s887_s2 = inlined_call_operand.vmem [shape: f32[2,1,1], index: 2, kind: output, shape index: {1}]  }
   0x1   :  { %10 = vsyncpa [#allocation5 + $0x1], 0  ;;  %s674_s9 = smov 0   ;;  %s676_s10 = smov 0  }
   0x2   :  { %s678_s11 = smov 0   ;;  %s680_s12 = smov 0  }
   0x3   :  { %s682_s13 = smov 0   ;;  %s684_s14 = smov 0  }
   0x4   :  { %s686_s15 = smov 0   ;;  %s688_s16 = smov 0  }
   0x5 LB: > { %s463_s17 = sadd.s32 4294967295, %s655_s16   ;;  %s25_s18 = sadd.s32 1, %s647_s14  ;;  %s655_s16 = sphi %s688_s16, %s16_s16   ;;  %s651_s15 = sphi %s686_s15, %s899_s15   ;;  %s647_s14 = sphi %s684_s14, %s898_s14   ;;  %s643_s13 = sphi %s682_s13, %s897_s13   ;;  %s639_s12 = sphi %s680_s12, %s896_s12   ;;  %s635_s11 = sphi %s678_s11, %s895_s11   ;;  %s631_s10 = sphi %s676_s10, %s894_s10   ;;  %s627_s9 = sphi %s674_s9, %s893_s9  }
   0x6   : > { %p26_p0 = scmp.ge.s32.totalorder %s25_s18, 4  ;;  %s28_s19 = sadd.s32 1, %s651_s15 }
   0x7   : > { %s37_s20 = sadd.s32 1, %s635_s11  ;;  %p44_p1 = scmp.ne.s32.totalorder %s635_s11, %s631_s10 }
   0x8   : > { %s901_s18 = smov (%p26_p0, %s25_s18), 0  ;;  %s903_s19 = smov (!%p26_p0, %s28_s19), %s651_s15 }
   0x9   : > { %s33_s21 = ssub.s32 %s647_s14, %s901_s18  ;;  %p45_p2 = scmp.eq.s32.totalorder %s655_s16, 0 }
   0xa   : > { %p30_p3 = scmp.ge.s32.totalorder %s903_s19, 2  ;;  %p50_p4 = scmp.ne.s32.totalorder %s631_s10, %s627_s9 }
   0xb   : > { %p725_p5 = por %p45_p2, %p44_p1  ;;  %p51_p6 = scmp.eq.s32.totalorder %s463_s17, 0 }
   0xc   : > { %s905_s19 = smov (%p30_p3, %s903_s19), 0  ;;  %p483_p8 = scmp.lt.s32.totalorder %s655_s16, 8 }
   0xd   : > { %p731_p7 = por %p51_p6, %p50_p4  ;;  %s32_s24 = ssub.s32 %s651_s15, %s905_s19 }
   0xe   : > { %s34_s25 = sor.u32 %s33_s21, %s32_s24  ;;  %s126_s26 = sand.u32 1, %s635_s11  }
   0xf   : > { %p35_p9 = scmp.eq.s32.totalorder %s34_s25, 0  ;;  %s467_s27 = sshll.u32 %s126_s26, 6 }
  0x10   : > { %s468_s28 = sshll.u32 %s647_s14, 4  ;;  %s469_s30 = sshll.u32 %s651_s15, 6 }
  0x11   : > { %s741_s29 = scalar_select %p35_p9, %s635_s11, %s37_s20  }
  0x12   : > { %s136_s3 = sadd.s32 %s469_s30, %s468_s28  ;;  %s130_s4 = scalar_lea.vmem [#allocation4], %s467_s27 }
  0x13   : > { %s140_s5 = sshll.u32 %s130_s4, 4  ;;  %s470_s6 = sshll.u32 %s136_s3, 6  ;;  %s744_s5 = int_to_ptr.vmem [resolvable:$true] %s140_s5 }
  0x14   : > { %s749_s9 = scalar_lea.hbm %s885_s0, %s470_s6  ;;  %p755_p10 = pnand %p483_p8, %p725_p5 }
  0x15   : > { %s127_s20 = scalar_lea.sflag [#allocation5], %s126_s26  ;;  %s559_s21 = scalar_lea.hbm %s749_s9, 1024 }
  0x16   : > { %p560_p13 = scmp.ne.s32.totalorder %s749_s9, %s559_s21  ;;  %p561_p0 = pneg %p755_p10 }
  0x17   : > { %s564_s25 = scalar_lea.hbm %s885_s0, 8192  ;;  %p565_p3 = scmp.lt.u32.totalorder %s749_s9, %s885_s0 }
  0x18   : > { %p562_p1 = pnand %p561_p0, %p560_p13  ;;  %p566_p4 = scmp.lt.u32.totalorder %s564_s25, %s559_s21 }
  0x19   : > { %p568_p6 = scmp.lt.u32.totalorder %s559_s21, %s749_s9 }
  0x1a   : > { %p563_p2 = pneg %p562_p1  ;;  %p567_p5 = por %p566_p4, %p565_p3 }
  0x1c   : > { %p569_p8 = por %p568_p6, %p567_p5 }
  0x1e   : > { %p570_p9 = pnand %p569_p8, %p563_p2 }
  0x20   : > { %573 = shalt.err (!%p570_p9)
}
  0x21   : > { %s574_s26 = scalar_lea.vmem %s744_s5, 1024  ;;  %s657_s30 = smov [#allocation4]  }
  0x22   : > { %p575_p13 = scmp.ne.s32.totalorder %s744_s5, %s574_s26  ;;  %s579_s3 = sshll.u32 %s657_s30, 4  ;;  %s580_s3 = int_to_ptr.vmem [resolvable:$false] %s579_s3 }
  0x23   : > { %s581_s4 = scalar_lea.vmem %s580_s3, 2048  ;;  %p582_p12 = scmp.lt.s32.totalorder %s744_s5, %s580_s3 }
  0x24   : > { %p577_p1 = pnand %p575_p13, %p561_p0  ;;  %p583_p3 = scmp.lt.s32.totalorder %s581_s4, %s574_s26 }
  0x26   : > { %p578_p11 = pneg %p577_p1  ;;  %p584_p4 = por %p583_p3, %p582_p12 }
  0x28   : > { %p585_p5 = pnand %p584_p4, %p578_p11 }
  0x2a   : > { %588 = shalt.err (!%p585_p5)
}
  0x2b   : > { %482 = dma.hbm_to_vmem [thread:$0]  (!%p755_p10), %s749_s9, 1024, %s744_s5, %s127_s20  }
  0x2c   : > { %p891_p2 = scmp.lt.s32.totalorder %s655_s16, 9  ;;  %p892_p6 = scmp.ge.s32.totalorder %s655_s16, 1 }
  0x2e   : > { %p146_p0 = pnand %p892_p6, %p891_p2 }
  0x2f   : > { %s151_s6 = sand.u32 (!%p146_p0), 1, %s631_s10  }
  0x30   : > { %149 = sbr.rel (%p146_p0) target bundleno = 290 (0x122), region = 24  ;;  %s472_s7 = sshll.u32 (!%p146_p0), %s151_s6, 6 }
  0x31   : > { %s152_s8 = scalar_lea.sflag (!%p146_p0), [#allocation5], %s151_s6  ;;  %s791_s21 = scalar_lea.vmem (!%p146_p0), [#allocation4], %s472_s7 }
  0x37   : > { %622 = dma.done.wait (%p731_p7), %s152_s8, 1024  }
  0x38   : > { %624 = vsyncadd (%p731_p7), %s152_s8, 4294966272  ;;  %p178_p11 = scmp.lt.s32.totalorder %s643_s13, 1  ;;  %p473_p10 = scmp.ne.s32.totalorder %s639_s12, 0 }
  0x39   : > { %vm188_vm0 = vcmask (!%p473_p10), 3072   ;;  %v658_v0 = vmov (!%p473_p10), 0.0  }
  0x3a   : > { %s907_s13 = smov (!%p178_p11, %s643_s13), 1  ;;  %187 = sbr.rel (%p473_p10) target bundleno = 65 (0x41), region = 32 }
  0x3b   : > { %s180_s17 = scalar_lea.vmem %s886_s1, %s907_s13  ;;  %s183_s24 = scalar_lea.vmem %s887_s2, %s907_s13  ;;  %189 = vst.msk [vmem:[#allocation2] sm:$0xf] (!%p473_p10), %vm188_vm0, %v658_v0  ;;  %190 = vst.msk [vmem:[#allocation3] sm:$0xf] (!%p473_p10), %vm188_vm0, %v658_v0 }
  0x41 PF: > { %v191_v1 = vld [vmem:[%s791_s21] sm:$0xff]  ;;  %v192_v2 = vld [vmem:[%s791_s21 + $0x8] sm:$0xff]  ;;  %vm224_vm1 = vcmask 1043456   ;;  %v193_v6 = vld [vmem:[%s791_s21 + $0x10] sm:$0xff]  ;;  %vm259_vm2 = vcmask 3072   ;;  %p474_p7 = scmp.ne.s32.totalorder %s639_s12, 3 }
  0x42   : > { %v208_v3 = vcombine.high %v191_v1, %v191_v1  ;;  %v209_v4 = vcombine.high %v192_v2, %v192_v2  ;;  %v225_v5 = vsel %vm224_vm1, %v191_v1, 0.0  ;;  %v228_v8 = vsel %vm224_vm1, %v192_v2, 0.0  ;;  %v194_v12 = vld [vmem:[%s791_s21 + $0x18] sm:$0xff]  ;;  %v195_v21 = vld [vmem:[%s791_s21 + $0x20] sm:$0xff]  ;;  %v196_v33 = vld [vmem:[%s791_s21 + $0x28] sm:$0xff] }
  0x43   : > { %v210_v10 = vcombine.high %v193_v6, %v193_v6  ;;  %v232_v14 = vsel %vm224_vm1, %v193_v6, 0.0  ;;  %v262_v15 = vmul.f32 %v191_v1, %v191_v1  ;;  %v263_v16 = vmul.f32 %v192_v2, %v192_v2  ;;  %v197_v45 = vld [vmem:[%s791_s21 + $0x30] sm:$0xff]  ;;  %v198_v57 = vld [vmem:[%s791_s21 + $0x38] sm:$0xff] }
  0x44   : > { %v226_v7 = vsel %vm224_vm1, %v208_v3, 0.0  ;;  %v230_v11 = vsel %vm224_vm1, %v209_v4, 0.0  ;;  %v211_v18 = vcombine.high %v194_v12, %v194_v12  ;;  %v264_v23 = vmul.f32 %v193_v6, %v193_v6 }
  0x45   : > { %v227_v9 = vadd.f32 %v226_v7, %v225_v5  ;;  %v234_v19 = vsel %vm224_vm1, %v210_v10, 0.0  ;;  %v278_v20 = vcombine.high %v262_v15, %v262_v15  ;;  %v279_v24 = vcombine.high %v263_v16, %v263_v16 }
  0x46   : > { %v236_v25 = vsel %vm224_vm1, %v194_v12, 0.0  ;;  %v294_v27 = vsel %vm224_vm1, %v262_v15, 0.0  ;;  %v297_v29 = vsel %vm224_vm1, %v263_v16, 0.0  ;;  %v212_v30 = vcombine.high %v195_v21, %v195_v21 }
  0x47   : > { %v229_v13 = vadd.f32 %v228_v8, %v227_v9  ;;  %v295_v28 = vsel %vm224_vm1, %v278_v20, 0.0  ;;  %v238_v31 = vsel %vm224_vm1, %v211_v18, 0.0  ;;  %v265_v35 = vmul.f32 %v194_v12, %v194_v12 }
  0x48   : > { %v296_v32 = vadd.f32 %v295_v28, %v294_v27  ;;  %v280_v36 = vcombine.high %v264_v23, %v264_v23  ;;  %v299_v37 = vsel %vm224_vm1, %v279_v24, 0.0  ;;  %v240_v38 = vsel %vm224_vm1, %v195_v21, 0.0 }
  0x49   : > { %v231_v17 = vadd.f32 %v230_v11, %v229_v13  ;;  %v301_v41 = vsel %vm224_vm1, %v264_v23, 0.0  ;;  %v213_v42 = vcombine.high %v196_v33, %v196_v33  ;;  %v242_v43 = vsel %vm224_vm1, %v212_v30, 0.0 }
  0x4a   : > { %v298_v39 = vadd.f32 %v297_v29, %v296_v32  ;;  %v266_v47 = vmul.f32 %v195_v21, %v195_v21  ;;  %v281_v48 = vcombine.high %v265_v35, %v265_v35  ;;  %v303_v49 = vsel %vm224_vm1, %v280_v36, 0.0 }
  0x4b   : > { %v233_v22 = vadd.f32 %v232_v14, %v231_v17  ;;  %v244_v50 = vsel %vm224_vm1, %v196_v33, 0.0  ;;  %v305_v53 = vsel %vm224_vm1, %v265_v35, 0.0  ;;  %v214_v54 = vcombine.high %v197_v45, %v197_v45 }
  0x4c   : > { %v300_v44 = vadd.f32 %v299_v37, %v298_v39  ;;  %v246_v55 = vsel %vm224_vm1, %v213_v42, 0.0  ;;  %v267_v59 = vmul.f32 %v196_v33, %v196_v33  ;;  %v282_v60 = vcombine.high %v266_v47, %v266_v47 }
  0x4d   : > { %v235_v26 = vadd.f32 %v234_v19, %v233_v22  ;;  %v307_v61 = vsel %vm224_vm1, %v281_v48, 0.0  ;;  %v248_v62 = vsel %vm224_vm1, %v197_v45, 0.0  ;;  %v309_v1 = vsel %vm224_vm1, %v266_v47, 0.0 }
  0x4e   : > { %v302_v51 = vadd.f32 %v301_v41, %v300_v44  ;;  %v215_v2 = vcombine.high %v198_v57, %v198_v57  ;;  %v250_v3 = vsel %vm224_vm1, %v214_v54, 0.0  ;;  %v268_v6 = vmul.f32 %v197_v45, %v197_v45 }
  0x4f   : > { %v237_v34 = vadd.f32 %v236_v25, %v235_v26  ;;  %v283_v7 = vcombine.high %v267_v59, %v267_v59  ;;  %v311_v8 = vsel %vm224_vm1, %v282_v60, 0.0  ;;  %v252_v9 = vsel %vm224_vm1, %v198_v57, 0.0 }
  0x50   : > { %v304_v56 = vadd.f32 %v303_v49, %v302_v51  ;;  %v313_v12 = vsel %vm224_vm1, %v267_v59, 0.0  ;;  %v254_v13 = vsel %vm224_vm1, %v215_v2, 0.0  ;;  %v269_v16 = vmul.f32 %v198_v57, %v198_v57 }
  0x51   : > { %v239_v40 = vadd.f32 %v238_v31, %v237_v34  ;;  %v284_v17 = vcombine.high %v268_v6, %v268_v6  ;;  %v315_v18 = vsel %vm224_vm1, %v283_v7, 0.0  ;;  %v317_v21 = vsel %vm224_vm1, %v268_v6, 0.0  ;;  %v199_v31 = vld [vmem:[#allocation2] sm:$0xf]  ;;  %v261_v34 = vld [vmem:[#allocation3] sm:$0xf] }
  0x52   : > { %v306_v63 = vadd.f32 %v305_v53, %v304_v56  ;;  %v285_v23 = vcombine.high %v269_v16, %v269_v16  ;;  %v321_v26 = vsel %vm224_vm1, %v269_v16, 0.0  ;;  %vm362_vm3 = vcmask (!%p474_p7), 0  }
  0x53   : > { %v241_v46 = vadd.f32 %v240_v38, %v239_v40  ;;  %v319_v24 = vsel %vm224_vm1, %v284_v17, 0.0 }
  0x54   : > { %v308_v4 = vadd.f32 %v307_v61, %v306_v63  ;;  %v323_v28 = vsel %vm224_vm1, %v285_v23, 0.0 }
  0x55   : > { %v243_v52 = vadd.f32 %v242_v43, %v241_v46 }
  0x56   : > { %v310_v10 = vadd.f32 %v309_v1, %v308_v4 }
  0x57   : > { %v245_v58 = vadd.f32 %v244_v50, %v243_v52 }
  0x58   : > { %v312_v14 = vadd.f32 %v311_v8, %v310_v10 }
  0x59   : > { %v247_v0 = vadd.f32 %v246_v55, %v245_v58 }
  0x5a   : > { %v314_v19 = vadd.f32 %v313_v12, %v312_v14 }
  0x5b   : > { %v249_v5 = vadd.f32 %v248_v62, %v247_v0 }
  0x5c   : > { %v316_v22 = vadd.f32 %v315_v18, %v314_v19 }
  0x5d   : > { %v251_v11 = vadd.f32 %v250_v3, %v249_v5 }
  0x5e   : > { %v318_v25 = vadd.f32 %v317_v21, %v316_v22 }
  0x5f   : > { %v253_v15 = vadd.f32 %v252_v9, %v251_v11 }
  0x60   : > { %v320_v27 = vadd.f32 %v319_v24, %v318_v25 }
  0x61   : > { %v255_v20 = vadd.f32 %v254_v13, %v253_v15 }
  0x62   : > { %v322_v29 = vadd.f32 %v321_v26, %v320_v27 }
  0x63   : > { %256 = vadd.xlane.f32.xlu0 %v255_v20 }
  0x64   : > { %v324_v30 = vadd.f32 %v323_v28, %v322_v29 }
  0x67   : > { %325 = vadd.xlane.f32.xlu0 %v324_v30 }
  0xf0   : > { %v257_v32 = vpop.xlane.xlu0 %256 }
  0xf1   : > { %v258_v33 = vadd.f32 %v257_v32, %v199_v31  ;;  %332 = sbr.rel (%p474_p7) target bundleno = 290 (0x122), region = 36 }
  0xf3   : > { %260 = vst.msk [vmem:[#allocation2] sm:$0xf] %vm259_vm2, %v258_v33 }
  0xf4   : > { %v326_v35 = vpop.xlane.xlu0 %325 }
  0xf5   : > { %v327_v36 = vadd.f32 %v326_v35, %v261_v34 }
  0xf7   : > { %328 = vst.msk [vmem:[#allocation3] sm:$0xf] %vm259_vm2, %v327_v36 }
  0xfa   : > { %v333_v37 = vld [vmem:[#allocation2] sm:$0xf] }
  0xfb   : > { %v334_v39 = vsel %vm259_vm2, %v333_v37, 0.0 }
  0xfc   : > { %v335_v41 = vrot.slane %v334_v39, 4 }
  0xfe   : > { %v341_v38 = vld [vmem:[#allocation3] sm:$0xf]  ;;  %v336_v43 = vadd.f32 %v335_v41, %v334_v39 }
  0xff   : > { %v342_v40 = vsel %vm259_vm2, %v341_v38, 0.0 }
 0x100   : > { %v343_v42 = vrot.slane %v342_v40, 4  ;;  %v337_v45 = vrot.slane %v336_v43, 2 }
 0x102   : > { %v344_v44 = vadd.f32 %v343_v42, %v342_v40  ;;  %v338_v47 = vadd.f32 %v337_v45, %v336_v43 }
 0x104   : > { %v345_v46 = vrot.slane %v344_v44, 2  ;;  %v339_v49 = vrot.slane %v338_v47, 1 }
 0x106   : > { %v346_v48 = vadd.f32 %v345_v46, %v344_v44  ;;  %v340_v51 = vadd.f32 %v339_v49, %v338_v47 }
 0x108   : > { %v347_v50 = vrot.slane %v346_v48, 1  ;;  %v349_v53 = vmul.f32 3.0517578e-05, %v340_v51 }
 0x10a   : > { %v348_v52 = vadd.f32 %v347_v50, %v346_v48  ;;  %v350_v54 = vmul.f32 %v349_v53, %v340_v51  ;;  %v361_v55 = vadd.f32 1e-07, %v349_v53 }
 0x10c   : > { %v351_v56 = vsub.f32 %v348_v52, %v350_v54  ;;  %363 = vst.msk [vmem:[%s180_s17] sm:$0x1] %vm362_vm3, %v361_v55 }
 0x10e   : > { %v352_v57 = vmul.f32 3.051851e-05, %v351_v56 }
 0x110   : > { %v353_v58 = vmax.f32 %v352_v57, 0.0 }
 0x112   : > { %557 = vrsqrt.f32 %v353_v58  ;;  %vm356_vm4 = vcmp.eq.f32.partialorder %v353_v58, inf  ;;  %v359_v60 = vand.u32 2147483648, %v353_v58  ;;  %vm358_vm5 = vcmp.eq.f32.partialorder %v353_v58, 0.0 }
 0x11c   : > { %v558_v59 = vpop.eup %557 }
 0x11d   : > { %v355_v61 = vmul.f32 %v558_v59, %v353_v58 }
 0x11f   : > { %v357_v62 = vsel %vm356_vm4, %v353_v58, %v355_v61 }
 0x120   : > { %v360_v63 = vsel %vm358_vm5, %v359_v60, %v357_v62 }
 0x121   : > { %364 = vst.msk [vmem:[%s183_s24] sm:$0x1] %vm362_vm3, %v360_v63 }
 0x122 PF: > { %s16_s16 = sadd.s32 1, %s655_s16   ;;  %s893_s9 = smov %s631_s10 }
 0x123   : > { %p13_p12 = scmp.ge.s32.totalorder %s16_s16, 10   ;;  %s894_s10 = smov %s635_s11 }
 0x124   : > { %s895_s11 = smov %s741_s29  ;;  %s896_s12 = smov %s647_s14 }
 0x125   : > { %s897_s13 = smov %s651_s15  ;;  %s898_s14 = smov %s901_s18 }
 0x126   : > { %s899_s15 = smov %s905_s19  ;;  %15 = sbr.rel (!%p13_p12) target bundleno = 5 (0x5), region = 84 }
 0x12d   :  { %394 = vsyncpa [#allocation5], 1 }
 0x12e   :  { %396 = vsyncpa [#allocation5 + $0x1], 1 }

</bundles_post_ra>
